<compile_context>
chip_gen: v6e
topology: v6e:2x2x1
jax: 0.10.0
libtpu: 0.0.40
codegen_flags: <defaults>
</compile_context>

<pallas_src>
import math
import functools

import jax
import jax.numpy as jnp
from jax.experimental import pallas as pl
from jax.experimental.pallas import tpu as pltpu


def _round_up(a: int, b: int) -> int:
    return -(-a // b) * b


def _cdiv(a: int, b: int) -> int:
    return -(-a // b)


def _sin_pos_emb_kernel(*refs, k):
    """sin(x * freq + phase) for one row tile (dense, lane-full store).

    k == 1 : refs = (x_ref[tr,1], freq_ref[1,W], phase_ref[1,W], out_ref[tr,W])
    k  > 1 : refs = (x_ref[tr,k], bcast_ref[k,W], freq_ref[1,W], phase_ref[1,W],
                     out_ref[tr,W])
    """
    if k == 1:
        x_ref, freq_ref, phase_ref, out_ref = refs
        tr = x_ref.shape[0]
        width = freq_ref.shape[1]
        xb = jnp.broadcast_to(x_ref[...].astype(jnp.float32), (tr, width))
    else:
        x_ref, bcast_ref, freq_ref, phase_ref, out_ref = refs
        # Column c of the packed output belongs to packed sub-row j = c // dim.
        # bcast_ref[j, c] = 1 iff c // dim == j, so one MXU matmul performs the
        # whole lane broadcast.  0/1 entries are exact in bf16, so HIGHEST
        # precision reproduces the f32 positions bit-exactly; the MXU slot is
        # otherwise idle, so this is free and removes all VPU/XLU select work.
        xb = jnp.dot(
            x_ref[...].astype(jnp.float32),
            bcast_ref[...],
            preferred_element_type=jnp.float32,
            precision=jax.lax.Precision.HIGHEST,
        )
    # One mul + one add (VPU) + one sin (EUP / VPU polynomial) per element.
    emb = xb * freq_ref[...] + phase_ref[...]
    out_ref[...] = jnp.sin(emb).astype(out_ref.dtype)


def sinusoidal_pos_emb(x, dim, out_dtype=None, max_tile_bytes=8 * 1024 * 1024):
    """Pallas wrapper. x: [B, T] -> [B, T, dim] with [sin(x*f) | cos(x*f)] layout."""
    assert dim % 2 == 0, "SinusoidalPosEmb requires an even dim"
    assert dim >= 4, "dim must be >= 4 (half_dim - 1 must be nonzero)"
    B, T = x.shape
    half_dim = dim // 2

    if out_dtype is None:
        out_dtype = x.dtype if jnp.issubdtype(x.dtype, jnp.floating) else jnp.float32
    out_itemsize = jnp.dtype(out_dtype).itemsize

    # --- host-side constants (computed once, tiny) ---------------------------
    scale = math.log(10000.0) / (half_dim - 1)
    freq = jnp.exp(jnp.arange(half_dim, dtype=jnp.float32) * (-scale))   # (half_dim,)
    freq2 = jnp.concatenate([freq, freq])                                # (dim,)
    phase1 = jnp.concatenate(
        [jnp.zeros((half_dim,), jnp.float32),
         jnp.full((half_dim,), math.pi / 2.0, jnp.float32)])             # (dim,)

    # Pack k logical rows per kernel row so the lane axis is a multiple of 128.
    k = 128 // math.gcd(dim, 128)
    width = k * dim
    freq_row = jnp.tile(freq2, (k,)).reshape(1, width)
    phase_row = jnp.tile(phase1, (k,)).reshape(1, width)
    if k > 1:
        # 0/1 block-diagonal broadcast matrix: bcast_mat[j, c] = (c // dim == j).
        bcast_mat = jnp.repeat(jnp.eye(k, dtype=jnp.float32), dim, axis=1)  # (k, width)

    # --- row tiling -----------------------------------------------------------
    N = B * T
    rows = _cdiv(N, k)
    # Cap per-tile output at 16 MiB: 2x double-buffered output must fit v7x's
    # 64 MiB per-TC VMEM with headroom.
    max_tile_bytes = min(int(max_tile_bytes), 16 << 20)
    budget_rows = max(8, (max_tile_bytes // (width * out_itemsize)) // 8 * 8)
    if rows <= 8:
        tile_rows = 8                      # single tiny step; nothing to split
    else:
        # >= 2 grid steps so both v7x TensorCores are used and DMA overlaps.
        steps = max(2, _cdiv(rows, budget_rows))
        tile_rows = min(budget_rows, _round_up(_cdiv(rows, steps), 8))
    rows_padded = _round_up(rows, tile_rows)
    num_steps = rows_padded // tile_rows
    n_padded = rows_padded * k

    x_flat = x.reshape(N).astype(jnp.float32)
    if n_padded != N:
        x_flat = jnp.pad(x_flat, (0, n_padded - N))
    x2d = x_flat.reshape(rows_padded, k)

    n_out = rows_padded * width
    flops = (2 * k + 2) * n_out if k > 1 else 2 * n_out
    vmem_needed = 2 * (tile_rows * k * 4
                       + tile_rows * width * out_itemsize
                       + (k + 2) * width * 4)
    vmem_limit = int(min(max(vmem_needed + (4 << 20), 32 << 20), 48 << 20))

    row_spec = pl.BlockSpec((tile_rows, k), lambda i: (i, 0))
    const_row = pl.BlockSpec((1, width), lambda i: (0, 0))
    if k == 1:
        operands = (x2d, freq_row, phase_row)
        in_specs = [row_spec, const_row, const_row]
    else:
        operands = (x2d, bcast_mat, freq_row, phase_row)
        in_specs = [row_spec,
                    pl.BlockSpec((k, width), lambda i: (0, 0)),
                    const_row, const_row]

    out2d = pl.pallas_call(
        functools.partial(_sin_pos_emb_kernel, k=k),
        out_shape=jax.ShapeDtypeStruct((rows_padded, width), out_dtype),
        grid=(num_steps,),
        in_specs=in_specs,
        out_specs=pl.BlockSpec((tile_rows, width), lambda i: (i, 0)),
        compiler_params=pltpu.CompilerParams(
            dimension_semantics=("parallel",),        # megacore sharding on v7x
            vmem_limit_bytes=vmem_limit,
        ),
        cost_estimate=pl.CostEstimate(
            flops=flops,                               # matmul + mul + add
            transcendentals=n_out,                     # one sin per element
            bytes_accessed=n_out * out_itemsize + n_padded * 4
            + (k + 2) * width * 4,
        ),
    )(*operands)

    if n_padded == N:
        # Padding-free path: plain row-major reshape, no slice, no extra copy.
        return out2d.reshape(B, T, dim)
    # Ragged tail: the slice may materialize one extra output copy unless XLA
    # fuses it into the consumer; shapes with B*T % k == 0 and rows % tile_rows
    # == 0 take the padding-free path above instead.
    return out2d.reshape(n_padded, dim)[:N].reshape(B, T, dim)


def _reference(x, dim):
    """Pure-JAX reference matching the PyTorch forward exactly."""
    half_dim = dim // 2
    scale = math.log(10000.0) / (half_dim - 1)
    freq = jnp.exp(jnp.arange(half_dim, dtype=jnp.float32) * (-scale))
    emb = x.astype(jnp.float32)[:, :, None] * freq[None, None, :]
    return jnp.concatenate([jnp.sin(emb), jnp.cos(emb)], axis=-1)


if __name__ == "__main__":
    key = jax.random.PRNGKey(0)
    k1, k2, k3 = jax.random.split(key, 3)

    # Case 1: canonical small shape (dim < 128 exercises the MXU-broadcast path).
    B, T, DIM = 2, 8, 32
    x = jax.random.uniform(k1, (B, T), dtype=jnp.float32) * 100.0
    out = jax.block_until_ready(sinusoidal_pos_emb(x, DIM))
    ref = _reference(x, DIM)
    assert out.shape == (B, T, DIM) and out.dtype == x.dtype
    # cos is computed as sin(t + pi/2); identical in exact arithmetic, differs
    # only by the f32 rounding of the phase add (< ~4e-6 for |t| <= 100).
    assert jnp.allclose(out, ref, atol=2e-5, rtol=1e-5)

    # Case 2: ragged length + small tile budget -> multi-step grid & padding path.
    B2, T2 = 2, 777
    x2 = jax.random.uniform(k2, (B2, T2), dtype=jnp.float32) * 100.0
    out2 = jax.block_until_ready(sinusoidal_pos_emb(x2, DIM, max_tile_bytes=64 * 1024))
    assert jnp.allclose(out2, _reference(x2, DIM), atol=2e-5, rtol=1e-5)

    # Case 3: lane-aligned dim (k == 1 broadcast path, >=2 grid steps, no padding).
    B3, T3, DIM3 = 2, 8, 256
    x3 = jax.random.uniform(k3, (B3, T3), dtype=jnp.float32) * 100.0
    out3 = jax.block_until_ready(sinusoidal_pos_emb(x3, DIM3))
    assert jnp.allclose(out3, _reference(x3, DIM3), atol=2e-5, rtol=1e-5)

    print("KERNEL_OK")
</pallas_src>

<mosaic_0001>
module attributes {stable_mosaic.version = 11 : i64} {
  func.func @_sin_pos_emb_kernel(%arg0: i32, %arg1: memref<8x4xf32, #tpu.memory_space<vmem>>, %arg2: memref<4x128xf32, #tpu.memory_space<vmem>>, %arg3: memref<1x128xf32, #tpu.memory_space<vmem>>, %arg4: memref<1x128xf32, #tpu.memory_space<vmem>>, %arg5: memref<8x128xf32, #tpu.memory_space<vmem>>) attributes {dimension_semantics = [#tpu.dimension_semantics<parallel>], iteration_bounds = array<i64: 1>, scalar_prefetch = 0 : i64, scratch_operands = 0 : i64, tpu.core_type = #tpu.core_type<tc>, window_params = [{transform_indices = @transform_0, window_bounds = array<i64: 8, 4>}, {pipeline_mode = #tpu.pipeline_mode<synchronous>, transform_indices = @transform_1, window_bounds = array<i64: 4, 128>}, {pipeline_mode = #tpu.pipeline_mode<synchronous>, transform_indices = @transform_2, window_bounds = array<i64: 1, 128>}, {pipeline_mode = #tpu.pipeline_mode<synchronous>, transform_indices = @transform_3, window_bounds = array<i64: 1, 128>}, {transform_indices = @transform_4, window_bounds = array<i64: 8, 128>}]} {
    %c0 = arith.constant 0 : index
    %c0_0 = arith.constant 0 : index
    %0 = vector.load %arg1[%c0, %c0_0] : memref<8x4xf32, #tpu.memory_space<vmem>>, vector<8x4xf32>
    %c0_1 = arith.constant 0 : index
    %c0_2 = arith.constant 0 : index
    %1 = vector.load %arg2[%c0_1, %c0_2] : memref<4x128xf32, #tpu.memory_space<vmem>>, vector<4x128xf32>
    %cst = arith.constant dense<0.000000e+00> : vector<8x128xf32>
    %2 = tpu.matmul %0, %1, %cst {dimension_numbers = #tpu.dot_dimension_numbers<[1], [0], [0], [1], [0, 0, 1, 1], [], []>, precision = #tpu.contract_precision<fp32>} : vector<8x4xf32>, vector<4x128xf32>, vector<8x128xf32> -> vector<8x128xf32>
    %c0_3 = arith.constant 0 : index
    %c0_4 = arith.constant 0 : index
    %3 = vector.load %arg3[%c0_3, %c0_4] : memref<1x128xf32, #tpu.memory_space<vmem>>, vector<1x128xf32>
    %4 = vector.broadcast %3 : vector<1x128xf32> to vector<8x128xf32>
    %5 = arith.mulf %2, %4 : vector<8x128xf32>
    %c0_5 = arith.constant 0 : index
    %c0_6 = arith.constant 0 : index
    %6 = vector.load %arg4[%c0_5, %c0_6] : memref<1x128xf32, #tpu.memory_space<vmem>>, vector<1x128xf32>
    %7 = vector.broadcast %6 : vector<1x128xf32> to vector<8x128xf32>
    %8 = arith.addf %5, %7 : vector<8x128xf32>
    %9 = math.sin %8 : vector<8x128xf32>
    %c0_7 = arith.constant 0 : index
    %c0_8 = arith.constant 0 : index
    %10 = vector.load %arg5[%c0_7, %c0_8] : memref<8x128xf32, #tpu.memory_space<vmem>>, vector<8x128xf32>
    tpu.vector_store %arg5[%c0_7, %c0_8], %9 {strides = array<i32>} : memref<8x128xf32, #tpu.memory_space<vmem>>, vector<8x128xf32>,
    return
  }
  func.func @transform_0(%arg0: i32) -> (i32, i32) {
    %c0_i32 = arith.constant 0 : i32
    %c0_i32_0 = arith.constant 0 : i32
    return %arg0, %c0_i32 : i32, i32
  }
  func.func @transform_1(%arg0: i32) -> (i32, i32) {
    %c0_i32 = arith.constant 0 : i32
    %c0_i32_0 = arith.constant 0 : i32
    %c0_i32_1 = arith.constant 0 : i32
    return %c0_i32, %c0_i32_0 : i32, i32
  }
  func.func @transform_2(%arg0: i32) -> (i32, i32) {
    %c0_i32 = arith.constant 0 : i32
    %c0_i32_0 = arith.constant 0 : i32
    %c0_i32_1 = arith.constant 0 : i32
    return %c0_i32, %c0_i32_0 : i32, i32
  }
  func.func @transform_3(%arg0: i32) -> (i32, i32) {
    %c0_i32 = arith.constant 0 : i32
    %c0_i32_0 = arith.constant 0 : i32
    %c0_i32_1 = arith.constant 0 : i32
    return %c0_i32, %c0_i32_0 : i32, i32
  }
  func.func @transform_4(%arg0: i32) -> (i32, i32) {
    %c0_i32 = arith.constant 0 : i32
    %c0_i32_0 = arith.constant 0 : i32
    return %arg0, %c0_i32 : i32, i32
  }
}

</mosaic_0001>

<bundles_post_ra>
// kernel: tpu_custom_call.1
= control target key start
LH: loop header
LB: loop body
LE: loop exit
PB: predicated region body
PF: predicated region fallthrough
CT: control target
= control target key end

     0   :  { %vm24_vm0 = vcmask 1043456   ;;  %v696_v2 = vmov 0.0   ;;  %vm697_vm1 = vmmov 0   ;;  %vm20_vm2 = vcmask 31744   ;;  %s772_s0 = inlined_call_operand.vmem [shape: f32[8,4], index: 0, kind: input, shape index: {}]   ;;  %s773_s1 = inlined_call_operand.vmem [shape: f32[4,128], index: 1, kind: input, shape index: {}]   ;;  %s774_s2 = inlined_call_operand.vmem [shape: f32[1,128], index: 2, kind: input, shape index: {}]   ;;  %s775_s3 = inlined_call_operand.vmem [shape: f32[1,128], index: 3, kind: input, shape index: {}]   ;;  %s776_s4 = inlined_call_operand.hbm [shape: f32[8,128], index: 4, kind: output, shape index: {}]  }
   0x1   :  { %v19_v0 = vld [vmem:[%s773_s1] sm:$0xf]  ;;  %627 = vmatprep.subr.mxu0 %v696_v2  ;;  %629 = vmatprep.mubr.msk.f32.mxu0 %vm697_vm1, %v696_v2 }
   0x2   :  { %v18_v1 = vld [vmem:[%s772_s0] sm:$0xff]  ;;  %v26_v3 = vsel %vm24_vm0, %v19_v0, 0 }
   0x3   :  { %9 = vsyncpa [#allocation3], 0  ;;  %v59_v4 = vand.u32 4294901760, %v26_v3  ;;  %632 = vmatprep.subr.mxu1 %v696_v2  ;;  %v22_v5 = vsel %vm20_vm2, %v18_v1, 0  ;;  %634 = vmatprep.mubr.msk.f32.mxu1 %vm697_vm1, %v696_v2  ;;  %v609_v29 = vld [vmem:[%s774_s2] ss:$0 sm:$0xff] }
   0x4   :  { %v94_v6 = vand.u32 4294901760, %v22_v5  ;;  %v610_v33 = vld [vmem:[%s775_s3] ss:$0 sm:$0xff]  ;;  %v698_v46 = vmov 683565275   ;;  %s704_s2 = smov [#allocation2]  }
   0x5   :  { %628 = vmatpush3.msra.mxu0 %v59_v4  ;;  %v136_v7 = vsub.f32 %v26_v3, %v59_v4  ;;  %v699_v48 = vmov 2475754826   ;;  %v700_v51 = vmov 2131351028   ;;  %v701_v54 = vmov 2102212464  }
   0x6   :  { %637 = vmatprep.subr.mxu0 %v696_v2  ;;  %v95_v8 = vsub.f32 %v22_v5, %v94_v6  ;;  %v702_v57 = vmov 920167782   ;;  %v703_v60 = vmov 1326507024   ;;  %s601_s3 = sshll.u32 %s704_s2, 4  ;;  %s602_s3 = int_to_ptr.vmem [resolvable:$true] %s601_s3 }
   0x7   :  { %v137_v9 = vand.u32 4294901760, %v136_v7  ;;  %s674_s21 = scalar_lea.vmem %s602_s3, 128  ;;  %p679_p1 = scmp.lt.s32.totalorder %s602_s3, %s602_s3 }
   0x8   :  { %v96_v10 = vand.u32 4294901760, %v95_v8  ;;  %p675_p0 = scmp.ne.s32.totalorder %s602_s3, %s674_s21  ;;  %p680_p2 = scmp.lt.s32.totalorder %s674_s21, %s674_s21 }
   0x9   :  { %v138_v11 = vsub.f32 %v136_v7, %v137_v9 }
   0xa   :  { %v97_v12 = vsub.f32 %v95_v8, %v96_v10  ;;  %p681_p3 = por %p680_p2, %p679_p1 }
   0xb   :  { %v139_v13 = vand.u32 4294901760, %v138_v11 }
   0xc   :  { %v98_v14 = vand.u32 4294901760, %v97_v12  ;;  %p682_p4 = pnand %p681_p3, %p675_p0 }
   0xd   :  { %633 = vmatpush3.msra.mxu1 %v139_v13 }
   0xe   :  { %630 = vmatmul.mubr.f32.vlgmr.msra.gmra.mxu0 %v98_v14  ;;  %635 = vmatmul.mubr.f32.vlgmr.msra.gmra.mxu1 %v94_v6 }
   0xf   :  { %638 = vmatpush3.msra.mxu0 %v136_v7  ;;  %642 = vmatprep.subr.mxu1 %v696_v2 }
  0x10   :  { %643 = vmatpush3.msra.mxu1 %v59_v4  ;;  %639 = vmatprep.mubr.msk.f32.mxu0 %vm697_vm1, %v696_v2 }
  0x11   :  { %647 = vmatprep.subr.mxu0 %v696_v2  ;;  %644 = vmatprep.mubr.msk.f32.mxu1 %vm697_vm1, %v696_v2 }
  0x12   :  { %640 = vmatmul.mubr.f32.vlgmr.msra.gmra.mxu0 %v95_v8  ;;  %645 = vmatmul.mubr.f32.vlgmr.msra.gmra.mxu1 %v96_v10 }
  0x13   :  { %648 = vmatpush3.msra.mxu0 %v137_v9  ;;  %652 = vmatprep.subr.mxu1 %v696_v2 }
  0x14   :  { %653 = vmatpush3.msra.mxu1 %v59_v4  ;;  %649 = vmatprep.mubr.msk.f32.mxu0 %vm697_vm1, %v696_v2 }
  0x15   :  { %654 = vmatprep.mubr.msk.f32.mxu1 %vm697_vm1, %v696_v2 }
  0x16   :  { %650 = vmatmul.mubr.f32.vlgmr.msra.gmra.mxu0 %v94_v6  ;;  %655 = vmatmul.mubr.f32.vlgmr.msra.gmra.mxu1 %v94_v6 }
  0xce   :  { %v100_v15 = vpop.f32.mrf.mxu0  ;;  %v176_v16 = vpop.f32.mrf.mxu1 }
  0xcf   :  { %v177_v17 = vadd.f32 %v176_v16, %v100_v15 }
  0xd0   :  { %v631_v18 = vpop.f32.mrf.mxu0  ;;  %v636_v19 = vpop.f32.mrf.mxu1 }
  0xd2   :  { %v250_v20 = vpop.f32.mrf.mxu0  ;;  %v324_v21 = vpop.f32.mrf.mxu1 }
  0xd3   :  { %v251_v22 = vadd.f32 %v250_v20, %v177_v17 }
  0xd4   :  { %v641_v23 = vpop.f32.mrf.mxu0  ;;  %v646_v24 = vpop.f32.mrf.mxu1 }
  0xd5   :  { %v325_v25 = vadd.f32 %v324_v21, %v251_v22 }
  0xd6   :  { %v398_v26 = vpop.f32.mrf.mxu0  ;;  %v470_v27 = vpop.f32.mrf.mxu1 }
  0xd7   :  { %v399_v28 = vadd.f32 %v398_v26, %v325_v25 }
  0xd8   :  { %v651_v30 = vpop.f32.mrf.mxu0  ;;  %v656_v31 = vpop.f32.mrf.mxu1 }
  0xd9   :  { %v471_v32 = vadd.f32 %v470_v27, %v399_v28 }
  0xdb   :  { %v481_v34 = vmul.f32 %v609_v29, %v471_v32 }
  0xdd   :  { %v748_v35 = vadd.f32 %v610_v33, %v481_v34 }
  0xdf   :  { %v493_v36 = vand.u32 2139095040, %v748_v35  ;;  %v490_v40 = vand.u32 2147483647, %v748_v35  ;;  %vm492_vm10 = vcmp.lt.s32.totalorder %v748_v35, 0  ;;  %vm582_vm15 = vweird.f32 %v748_v35 }
  0xe1   :  { %v494_v37 = vshrl.u32 %v493_v36, 23  ;;  %v497_v44 = vand.u32 8388607, %v490_v40  ;;  %vm491_vm11 = vcmp.le.f32.partialorder %v490_v40, 0.7853982 }
  0xe3   :  { %v611_v38 = vadd.s32 4294967169, %v494_v37  ;;  %v498_v62 = vor.u32 8388608, %v497_v44 }
  0xe5   :  { %v500_v39 = vadd.s32 1, %v611_v38  ;;  %v538_v12 = vshll.u32 %v498_v62, 8 }
  0xe7   :  { %vm501_vm3 = vcmp.gt.s32.totalorder %v500_v39, 0 }
  0xe8   :  { %v502_v41 = vsel %vm501_vm3, %v500_v39, 0 }
  0xe9   :  { %v504_v42 = vand.u32 31, %v502_v41  ;;  %v503_v45 = vshrl.u32 %v502_v41, 5 }
  0xeb   :  { %v505_v43 = vsub.s32 32, %v504_v42  ;;  %v507_v47 = vshll.u32 %v698_v46, %v504_v42  ;;  %v510_v49 = vshll.u32 %v699_v48, %v504_v42  ;;  %v513_v53 = vshll.u32 %v700_v51, %v504_v42 }
  0xec   :  { %v516_v56 = vshll.u32 %v701_v54, %v504_v42  ;;  %v519_v59 = vshll.u32 %v702_v57, %v504_v42  ;;  %vm522_vm4 = vcmp.lt.s32.totalorder %v503_v45, 1  ;;  %vm525_vm5 = vcmp.lt.s32.totalorder %v503_v45, 4 }
  0xed   :  { %v508_v50 = vshrl.u32 %v699_v48, %v505_v43  ;;  %v511_v52 = vshrl.u32 %v700_v51, %v505_v43  ;;  %v514_v55 = vshrl.u32 %v701_v54, %v505_v43  ;;  %v517_v58 = vshrl.u32 %v702_v57, %v505_v43 }
  0xee   :  { %v520_v61 = vshrl.u32 %v703_v60, %v505_v43  ;;  %v506_v7 = vshrl.u32 %v698_v46, %v505_v43  ;;  %vm524_vm6 = vcmp.lt.s32.totalorder %v503_v45, 3  ;;  %vm523_vm7 = vcmp.lt.s32.totalorder %v503_v45, 2 }
  0xef   :  { %v509_v63 = vor.u32 %v508_v50, %v507_v47  ;;  %v512_v0 = vor.u32 %v511_v52, %v510_v49  ;;  %v515_v1 = vor.u32 %v514_v55, %v513_v53  ;;  %v518_v2 = vor.u32 %v517_v58, %v516_v56 }
  0xf0   :  { %v521_v3 = vor.u32 %v520_v61, %v519_v59 }
  0xf1   :  { %v527_v4 = vsel %vm525_vm5, %v515_v1, 2102212464  ;;  %v530_v5 = vsel %vm522_vm4, %v509_v63, %v512_v0  ;;  %v534_v6 = vsel %vm522_vm4, %v512_v0, %v515_v1  ;;  %v531_v8 = vsel %vm525_vm5, %v518_v2, 920167782 }
  0xf2   :  { %v535_v9 = vsel %vm525_vm5, %v521_v3, 1326507024  ;;  %v532_v10 = vsel %vm524_vm6, %v515_v1, %v531_v8  ;;  %v526_v13 = vsel %vm522_vm4, %v506_v7, %v509_v63  ;;  %v528_v14 = vsel %vm524_vm6, %v512_v0, %v527_v4 }
  0xf3   :  { %v536_v11 = vsel %vm524_vm6, %v518_v2, %v535_v9  ;;  %v533_v15 = vsel %vm523_vm7, %v530_v5, %v532_v10  ;;  %v529_v21 = vsel %vm523_vm7, %v526_v13, %v528_v14 }
  0xf4   :  { %v537_v16 = vsel %vm523_vm7, %v534_v6, %v536_v11  ;;  %v757_v19 = vmul.u32.u64.low %v538_v12, %v533_v15  ;;  %v758_v20 = vmul.u32.u64.high %v538_v12, %v533_v15, %v757_v19  ;;  %v545_v23 = vmul.u32 %v538_v12, %v529_v21 }
  0xf5   :  { %v754_v17 = vmul.u32.u64.low %v538_v12, %v537_v16  ;;  %v755_v18 = vmul.u32.u64.high %v538_v12, %v537_v16, %v754_v17 }
  0xf6   :  { %v548_v22 = vadd.s32 1, %v758_v20 }
  0xf7   :  { %vm547_vm8 = vc.u32 %v755_v18, %v757_v19  ;;  %v546_v36 = vadd.s32 %v757_v19, %v755_v18 }
  0xf8   :  { %v549_v24 = vsel %vm547_vm8, %v548_v22, %v758_v20 }
  0xf9   :  { %v550_v25 = vadd.s32 %v549_v24, %v545_v23 }
  0xfb   :  { %v551_v26 = vadd.s32 536870912, %v550_v25 }
  0xfd   :  { %v552_v27 = vshrl.u32 %v551_v26, 30 }
  0xff   :  { %v553_v28 = vshll.u32 %v552_v27, 30  ;;  %v576_v50 = vsub.s32 4, %v552_v27 }
 0x101   :  { %v554_v29 = vsub.s32 %v550_v25, %v553_v28  ;;  %v577_v53 = vsel %vm492_vm10, %v576_v50, %v552_v27 }
 0x102   :  { %v579_v54 = vsel %vm491_vm11, 0, %v577_v53 }
 0x103   :  { %v556_v30 = vsub.s32 0, %v554_v29  ;;  %v583_v55 = vadd.s32 3, %v579_v54 }
 0x105   :  { %v612_v31 = vmin.u32 %v556_v30, %v554_v29  ;;  %v584_v56 = vand.u32 3, %v583_v55 }
 0x107   :  { %v558_v32 = vclz %v612_v31  ;;  %vm589_vm12 = vcmp.eq.s32.totalorder %v584_v56, 2  ;;  %vm586_vm13 = vcmp.eq.s32.totalorder %v584_v56, 0  ;;  %vm585_vm14 = vcmp.lt.s32.totalorder %v584_v56, 2 }
 0x109   :  { %v613_v33 = vadd.s32 4294967294, %v558_v32 }
 0x10b   :  { %vm614_vm9 = vcmp.lt.s32.totalorder %v613_v33, 0 }
 0x10c   :  { %v561_v34 = vsel %vm614_vm9, 0, %v613_v33 }
 0x10d   :  { %v562_v37 = vsub.s32 32, %v561_v34  ;;  %v566_v38 = vsub.s32 4294967266, %v561_v34  ;;  %v563_v39 = vshll.u32 %v554_v29, %v561_v34 }
 0x10f   :  { %v564_v41 = vshrl.u32 %v546_v36, %v562_v37  ;;  %v567_v42 = vadd.s32 127, %v566_v38 }
 0x111   :  { %v565_v43 = vor.u32 %v564_v41, %v563_v39  ;;  %v568_v44 = vshll.u32 %v567_v42, 23 }
 0x113   :  { %v569_v45 = vor.u32 4788187, %v568_v44  ;;  %v572_v47 = vcvt.s32.f32 %v565_v43 }
 0x115   :  { %v570_v46 = vand.u32 2147483647, %v569_v45 }
 0x117   :  { %v573_v48 = vmul.f32 %v572_v47, %v570_v46 }
 0x119   :  { %v574_v49 = vxor.u32 2147483648, %v573_v48 }
 0x11b   :  { %v575_v51 = vsel %vm492_vm10, %v574_v49, %v573_v48 }
 0x11c   :  { %v578_v52 = vsel %vm491_vm11, %v748_v35, %v575_v51 }
 0x11d   :  { %670 = vcosq.f32 %v578_v52 }
 0x11e   :  { %672 = vsinq.f32 %v578_v52 }
 0x12a   :  { %v671_v57 = vpop.eup %670 }
 0x12b   :  { %v673_v58 = vpop.eup %672  ;;  %v590_v59 = vxor.u32 2147483648, %v671_v57 }
 0x12c   :  { %v587_v60 = vxor.u32 2147483648, %v673_v58 }
 0x12d   :  { %v591_v61 = vsel %vm589_vm12, %v590_v59, %v673_v58 }
 0x12e   :  { %v588_v40 = vsel %vm586_vm13, %v671_v57, %v587_v60 }
 0x12f   :  { %v592_v62 = vsel %vm585_vm14, %v588_v40, %v591_v61 }
 0x130   :  { %v593_v63 = vsel %vm582_vm15, nan, %v592_v62 }
 0x131   :  { %594 = vst [vmem:[#allocation2] sm:$0xff] %v593_v63 }
 0x132   :  { %685 = shalt.err (!%p682_p4)
}
 0x133   :  { %604 = dma.vmem_to_hbm [thread:$0]  %s602_s3, 128, %s776_s4, [#allocation3]  }
 0x134   :  { %694 = dma.done.wait [#allocation3], 128  }
 0x135   :  { %695 = vsyncadd [#allocation3], 4294967168 }
 0x136   :  { %608 = vsyncpa [#allocation3], 1 }

</bundles_post_ra>
